<compile_context>
chip_gen: v5e
topology: v5e:2x2
jax: 0.10.0
libtpu: 0.0.40
codegen_flags: <defaults>
</compile_context>

<pallas_src>
import functools

import jax
import jax.numpy as jnp
from jax.experimental import pallas as pl
from jax.experimental.pallas import tpu as pltpu

# 48 MiB: above the 16/32 MiB scoped defaults, below v7x's 64 MiB physical VMEM.
_VMEM_LIMIT_BYTES = 48 * 1024 * 1024
_MM_DTYPE = jnp.bfloat16  # MXU input dtype; accumulation stays f32.


def _pick_tile(n, target):
    """Largest multiple-of-8 divisor of n that is <= target (or n itself)."""
    if n <= target:
        return n
    t = (target // 8) * 8
    while t >= 8:
        if n % t == 0:
            return t
        t -= 8
    return n  # fall back to the full (untiled) extent


# ---------------------------------------------------------------------------
# Kernel 1: fused QKV projection  (x @ Wqkv), tiled over (batch, seq blocks).
# ---------------------------------------------------------------------------
def _qkv_proj_kernel(x_ref, w_ref, o_ref):
    # x_ref: (1, TS, D) bf16, w_ref: (D, 3*H*dh) bf16, o_ref: (1, TS, 3*H*dh) bf16
    o_ref[0] = jnp.dot(
        x_ref[0], w_ref[...], preferred_element_type=jnp.float32
    ).astype(o_ref.dtype)


# ---------------------------------------------------------------------------
# Kernel 2: flash attention over kv blocks + fused output projection epilogue.
# Grid: (B, q_blocks, kv_blocks);  kv is the (sequential) reduction axis.
# ---------------------------------------------------------------------------
def _make_flash_kernel(scale):
    def kernel(q_ref, k_ref, v_ref, wout_ref, o_ref, m_scr, l_scr, acc_scr):
        # q_ref: (1, H, TQ, dh) bf16      k_ref/v_ref: (1, H, TK, dh) bf16
        # wout_ref: (H, dh, D) bf16       o_ref: (1, TQ, D)
        # scratch: m/l (H, TQ, 1) f32, acc (H, TQ, dh) f32
        kv = pl.program_id(2)

        @pl.when(kv == 0)
        def _():
            m_scr[...] = jnp.full(m_scr.shape, -jnp.inf, dtype=m_scr.dtype)
            l_scr[...] = jnp.zeros(l_scr.shape, dtype=l_scr.dtype)
            acc_scr[...] = jnp.zeros(acc_scr.shape, dtype=acc_scr.dtype)

        q = q_ref[0]  # (H, TQ, dh)
        k = k_ref[0]  # (H, TK, dh)
        v = v_ref[0]  # (H, TK, dh)

        # Batched over heads, contracting dh directly (no explicit transpose).
        s = jnp.einsum(
            "hqd,hkd->hqk", q, k, preferred_element_type=jnp.float32
        ) * scale  # (H, TQ, TK) f32

        # Online softmax (all f32 on the VPU/EUP).
        m_prev = m_scr[...]                                        # (H, TQ, 1)
        m_new = jnp.maximum(m_prev, jnp.max(s, axis=-1, keepdims=True))
        alpha = jnp.exp(m_prev - m_new)
        p = jnp.exp(s - m_new)                                     # (H, TQ, TK)

        l_scr[...] = alpha * l_scr[...] + jnp.sum(p, axis=-1, keepdims=True)
        pv = jnp.einsum(
            "hqk,hkd->hqd", p.astype(v.dtype), v,
            preferred_element_type=jnp.float32,
        )                                                          # (H, TQ, dh)
        acc_scr[...] = alpha * acc_scr[...] + pv
        m_scr[...] = m_new

        @pl.when(kv == pl.num_programs(2) - 1)
        def _():
            # Normalize (EUP approx reciprocal) and fuse head-merge + out proj:
            # out[q, D] = sum_h (acc[h] / l[h]) @ Wout[h]
            out_h = acc_scr[...] * pl.reciprocal(l_scr[...], approx=True)
            out_hd = jnp.einsum(
                "hqd,hdo->hqo", out_h.astype(wout_ref.dtype), wout_ref[...],
                preferred_element_type=jnp.float32,
            )                                                      # (H, TQ, D)
            o_ref[0] = jnp.sum(out_hd, axis=0).astype(o_ref.dtype)

    return kernel


# ---------------------------------------------------------------------------
# Wrapper
# ---------------------------------------------------------------------------
@functools.partial(jax.jit, static_argnames=("heads", "dim_head",
                                             "seq_block", "q_block", "kv_block"))
def attention_forward(x, w_qkv, w_out, *, heads, dim_head,
                      seq_block=512, q_block=256, kv_block=512):
    """x: (B, N, D); w_qkv: (D, 3*heads*dim_head); w_out: (heads*dim_head, D).

    Weights are stored (in, out), i.e. transposed w.r.t. torch.nn.Linear.
    """
    B, N, D = x.shape
    dim_inner = heads * dim_head
    scale = dim_head ** (-0.5)

    TS = _pick_tile(N, seq_block)
    TQ = _pick_tile(N, q_block)
    TK = _pick_tile(N, kv_block)

    xb = x.astype(_MM_DTYPE)
    wqkv_b = w_qkv.astype(_MM_DTYPE)
    # (H*dh, D) -> (H, dh, D) head-major for the fused output projection.
    wout_b = w_out.astype(_MM_DTYPE).reshape(heads, dim_head, D)

    # ---- QKV projection ---------------------------------------------------
    qkv = pl.pallas_call(
        _qkv_proj_kernel,
        out_shape=jax.ShapeDtypeStruct((B, N, 3 * dim_inner), _MM_DTYPE),
        grid_spec=pltpu.PrefetchScalarGridSpec(
            num_scalar_prefetch=0,
            grid=(B, N // TS),
            in_specs=[
                pl.BlockSpec((1, TS, D), lambda b, s: (b, s, 0)),
                pl.BlockSpec((D, 3 * dim_inner), lambda b, s: (0, 0)),
            ],
            out_specs=pl.BlockSpec((1, TS, 3 * dim_inner), lambda b, s: (b, s, 0)),
        ),
        compiler_params=pltpu.CompilerParams(
            dimension_semantics=("parallel", "parallel"),
            vmem_limit_bytes=_VMEM_LIMIT_BYTES,
        ),
    )(xb, wqkv_b)

    # Head-major relayout (cheap XLA pass, outside the kernels):
    # (B, N, 3*H*dh) -> (3, B, H, N, dh)
    qkv = qkv.reshape(B, N, 3, heads, dim_head).transpose(2, 0, 3, 1, 4)
    q, k, v = qkv[0], qkv[1], qkv[2]

    # ---- Flash attention + fused output projection ------------------------
    flash_kernel = _make_flash_kernel(scale)
    out = pl.pallas_call(
        flash_kernel,
        out_shape=jax.ShapeDtypeStruct((B, N, D), x.dtype),
        grid_spec=pltpu.PrefetchScalarGridSpec(
            num_scalar_prefetch=0,
            grid=(B, N // TQ, N // TK),
            in_specs=[
                pl.BlockSpec((1, heads, TQ, dim_head), lambda b, qi, ki: (b, 0, qi, 0)),
                pl.BlockSpec((1, heads, TK, dim_head), lambda b, qi, ki: (b, 0, ki, 0)),
                pl.BlockSpec((1, heads, TK, dim_head), lambda b, qi, ki: (b, 0, ki, 0)),
                pl.BlockSpec((heads, dim_head, D), lambda b, qi, ki: (0, 0, 0)),
            ],
            out_specs=pl.BlockSpec((1, TQ, D), lambda b, qi, ki: (b, qi, 0)),
            scratch_shapes=[
                pltpu.VMEM((heads, TQ, 1), jnp.float32),        # running max
                pltpu.VMEM((heads, TQ, 1), jnp.float32),        # running denom
                pltpu.VMEM((heads, TQ, dim_head), jnp.float32),  # accumulator
            ],
        ),
        compiler_params=pltpu.CompilerParams(
            dimension_semantics=("parallel", "parallel", "arbitrary"),
            vmem_limit_bytes=_VMEM_LIMIT_BYTES,
        ),
    )(q, k, v, wout_b)

    return out


# ---------------------------------------------------------------------------
# Plain-JAX reference mirroring the PyTorch module exactly (f32).
# ---------------------------------------------------------------------------
def reference_forward(x, w_qkv, w_out, *, heads, dim_head):
    B, N, D = x.shape
    scale = dim_head ** (-0.5)
    qkv = x @ w_qkv
    q, k, v = jnp.split(qkv, 3, axis=-1)

    def to_heads(t):  # 'b n (h d) -> b h n d'
        return t.reshape(B, N, heads, dim_head).transpose(0, 2, 1, 3)

    q, k, v = map(to_heads, (q, k, v))
    q = q * scale
    sim = jnp.einsum("bhid,bhjd->bhij", q, k)
    attn = jax.nn.softmax(sim, axis=-1)
    out = jnp.einsum("bhij,bhjd->bhid", attn, v)
    out = out.transpose(0, 2, 1, 3).reshape(B, N, heads * dim_head)
    return out @ w_out


if __name__ == "__main__":
    # Small shapes consistent with the module: dim=32, heads=2, dim_head=64.
    B, N, D = 2, 8, 32
    heads, dim_head = 2, 64
    dim_inner = heads * dim_head

    key = jax.random.PRNGKey(0)
    kx, kq, ko = jax.random.split(key, 3)

    x = jax.random.normal(kx, (B, N, D), dtype=jnp.float32)
    # Deterministic parameter init (nn.Linear without bias), stored as (in, out).
    w_qkv = jax.random.normal(kq, (D, 3 * dim_inner), dtype=jnp.float32) * (D ** -0.5)
    w_out = jax.random.normal(ko, (dim_inner, D), dtype=jnp.float32) * (dim_inner ** -0.5)

    out = attention_forward(x, w_qkv, w_out, heads=heads, dim_head=dim_head)
    out = jax.block_until_ready(out)

    ref = reference_forward(x, w_qkv, w_out, heads=heads, dim_head=dim_head)
    assert out.shape == (B, N, D)
    # bf16 MXU inputs (f32 accumulation / softmax) -> tolerance looser than f32.
    err = float(jnp.max(jnp.abs(out - ref)))
    assert jnp.allclose(out, ref, atol=1e-1, rtol=1e-1), f"mismatch vs reference (max abs err {err})"

    print("KERNEL_OK")
</pallas_src>

<mosaic_0001>
module attributes {stable_mosaic.version = 11 : i64} {
  func.func @_qkv_proj_kernel(%arg0: i32, %arg1: i32, %arg2: memref<1x8x32xbf16, #tpu.memory_space<vmem>>, %arg3: memref<32x384xbf16, #tpu.memory_space<vmem>>, %arg4: memref<1x8x384xbf16, #tpu.memory_space<vmem>>) attributes {dimension_semantics = [#tpu.dimension_semantics<parallel>, #tpu.dimension_semantics<parallel>], iteration_bounds = array<i64: 2, 1>, scalar_prefetch = 0 : i64, scratch_operands = 0 : i64, tpu.core_type = #tpu.core_type<tc>, window_params = [{transform_indices = @transform_0, window_bounds = array<i64: 1, 8, 32>}, {pipeline_mode = #tpu.pipeline_mode<synchronous>, transform_indices = @transform_1, window_bounds = array<i64: 32, 384>}, {transform_indices = @transform_2, window_bounds = array<i64: 1, 8, 384>}]} {
    %c0 = arith.constant 0 : index
    %c0_0 = arith.constant 0 : index
    %c0_1 = arith.constant 0 : index
    %0 = vector.load %arg2[%c0, %c0_0, %c0_1] : memref<1x8x32xbf16, #tpu.memory_space<vmem>>, vector<1x8x32xbf16>
    %1 = vector.shape_cast %0 : vector<1x8x32xbf16> to vector<8x32xbf16>
    %c0_2 = arith.constant 0 : index
    %c0_3 = arith.constant 0 : index
    %2 = vector.load %arg3[%c0_2, %c0_3] : memref<32x384xbf16, #tpu.memory_space<vmem>>, vector<32x384xbf16>
    %cst = arith.constant dense<0.000000e+00> : vector<8x384xf32>
    %3 = tpu.matmul %1, %2, %cst {dimension_numbers = #tpu.dot_dimension_numbers<[1], [0], [0], [1], [0, 0, 1, 1], [], []>} : vector<8x32xbf16>, vector<32x384xbf16>, vector<8x384xf32> -> vector<8x384xf32>
    %4 = arith.truncf %3 : vector<8x384xf32> to vector<8x384xbf16>
    %c0_4 = arith.constant 0 : index
    %c0_5 = arith.constant 0 : index
    %c0_6 = arith.constant 0 : index
    %5 = vector.load %arg4[%c0_4, %c0_5, %c0_6] : memref<1x8x384xbf16, #tpu.memory_space<vmem>>, vector<1x8x384xbf16>
    %6 = vector.shape_cast %5 : vector<1x8x384xbf16> to vector<8x384xbf16>
    %7 = vector.shape_cast %4 : vector<8x384xbf16> to vector<1x8x384xbf16>
    tpu.vector_store %arg4[%c0_4, %c0_5, %c0_6], %7 {strides = array<i32>} : memref<1x8x384xbf16, #tpu.memory_space<vmem>>, vector<1x8x384xbf16>,
    return
  }
  func.func @transform_0(%arg0: i32, %arg1: i32) -> (i32, i32, i32) {
    %c0_i32 = arith.constant 0 : i32
    %c0_i32_0 = arith.constant 0 : i32
    return %arg0, %arg1, %c0_i32 : i32, i32, i32
  }
  func.func @transform_1(%arg0: i32, %arg1: i32) -> (i32, i32) {
    %c0_i32 = arith.constant 0 : i32
    %c0_i32_0 = arith.constant 0 : i32
    %c0_i32_1 = arith.constant 0 : i32
    return %c0_i32, %c0_i32_0 : i32, i32
  }
  func.func @transform_2(%arg0: i32, %arg1: i32) -> (i32, i32, i32) {
    %c0_i32 = arith.constant 0 : i32
    %c0_i32_0 = arith.constant 0 : i32
    return %arg0, %arg1, %c0_i32 : i32, i32, i32
  }
}

module attributes {stable_mosaic.version = 11 : i64} {
  func.func @kernel(%arg0: i32, %arg1: i32, %arg2: i32, %arg3: memref<1x2x8x64xbf16, #tpu.memory_space<vmem>>, %arg4: memref<1x2x8x64xbf16, #tpu.memory_space<vmem>>, %arg5: memref<1x2x8x64xbf16, #tpu.memory_space<vmem>>, %arg6: memref<2x64x32xbf16, #tpu.memory_space<vmem>>, %arg7: memref<1x8x32xf32, #tpu.memory_space<vmem>>, %arg8: memref<2x8x1xf32, #tpu.memory_space<vmem>>, %arg9: memref<2x8x1xf32, #tpu.memory_space<vmem>>, %arg10: memref<2x8x64xf32, #tpu.memory_space<vmem>>) attributes {dimension_semantics = [#tpu.dimension_semantics<parallel>, #tpu.dimension_semantics<parallel>, #tpu.dimension_semantics<arbitrary>], iteration_bounds = array<i64: 2, 1, 1>, scalar_prefetch = 0 : i64, scratch_operands = 3 : i64, tpu.core_type = #tpu.core_type<tc>, window_params = [{transform_indices = @transform_0, window_bounds = array<i64: 1, 2, 8, 64>}, {transform_indices = @transform_1, window_bounds = array<i64: 1, 2, 8, 64>}, {transform_indices = @transform_2, window_bounds = array<i64: 1, 2, 8, 64>}, {pipeline_mode = #tpu.pipeline_mode<synchronous>, transform_indices = @transform_3, window_bounds = array<i64: 2, 64, 32>}, {transform_indices = @transform_4, window_bounds = array<i64: 1, 8, 32>}]} {
    %c0_i32 = arith.constant 0 : i32
    %0 = arith.cmpi eq, %arg2, %c0_i32 : i32
    %1 = arith.extui %0 : i1 to i32
    %c0_i32_0 = arith.constant 0 : i32
    %2 = arith.cmpi ne, %1, %c0_i32_0 : i32
    scf.if %2 {
      %cst_36 = arith.constant 0xFF800000 : f32
      %38 = vector.broadcast %cst_36 : f32 to vector<2x8x1xf32>
      %c0_37 = arith.constant 0 : index
      %c0_38 = arith.constant 0 : index
      %c0_39 = arith.constant 0 : index
      %39 = vector.load %arg8[%c0_37, %c0_38, %c0_39] : memref<2x8x1xf32, #tpu.memory_space<vmem>>, vector<2x8x1xf32>
      tpu.vector_store %arg8[%c0_37, %c0_38, %c0_39], %38 {strides = array<i32>} : memref<2x8x1xf32, #tpu.memory_space<vmem>>, vector<2x8x1xf32>,
      %cst_40 = arith.constant 0.000000e+00 : f32
      %40 = vector.broadcast %cst_40 : f32 to vector<2x8x1xf32>
      %c0_41 = arith.constant 0 : index
      %c0_42 = arith.constant 0 : index
      %c0_43 = arith.constant 0 : index
      %41 = vector.load %arg9[%c0_41, %c0_42, %c0_43] : memref<2x8x1xf32, #tpu.memory_space<vmem>>, vector<2x8x1xf32>
      tpu.vector_store %arg9[%c0_41, %c0_42, %c0_43], %40 {strides = array<i32>} : memref<2x8x1xf32, #tpu.memory_space<vmem>>, vector<2x8x1xf32>,
      %cst_44 = arith.constant 0.000000e+00 : f32
      %42 = vector.broadcast %cst_44 : f32 to vector<2x8x64xf32>
      %c0_45 = arith.constant 0 : index
      %c0_46 = arith.constant 0 : index
      %c0_47 = arith.constant 0 : index
      %43 = vector.load %arg10[%c0_45, %c0_46, %c0_47] : memref<2x8x64xf32, #tpu.memory_space<vmem>>, vector<2x8x64xf32>
      tpu.vector_store %arg10[%c0_45, %c0_46, %c0_47], %42 {strides = array<i32>} : memref<2x8x64xf32, #tpu.memory_space<vmem>>, vector<2x8x64xf32>,
    } else {
    }
    %c0 = arith.constant 0 : index
    %c0_1 = arith.constant 0 : index
    %c0_2 = arith.constant 0 : index
    %c0_3 = arith.constant 0 : index
    %3 = vector.load %arg3[%c0, %c0_1, %c0_2, %c0_3] : memref<1x2x8x64xbf16, #tpu.memory_space<vmem>>, vector<1x2x8x64xbf16>
    %4 = vector.shape_cast %3 : vector<1x2x8x64xbf16> to vector<2x8x64xbf16>
    %c0_4 = arith.constant 0 : index
    %c0_5 = arith.constant 0 : index
    %c0_6 = arith.constant 0 : index
    %c0_7 = arith.constant 0 : index
    %5 = vector.load %arg4[%c0_4, %c0_5, %c0_6, %c0_7] : memref<1x2x8x64xbf16, #tpu.memory_space<vmem>>, vector<1x2x8x64xbf16>
    %6 = vector.shape_cast %5 : vector<1x2x8x64xbf16> to vector<2x8x64xbf16>
    %c0_8 = arith.constant 0 : index
    %c0_9 = arith.constant 0 : index
    %c0_10 = arith.constant 0 : index
    %c0_11 = arith.constant 0 : index
    %7 = vector.load %arg5[%c0_8, %c0_9, %c0_10, %c0_11] : memref<1x2x8x64xbf16, #tpu.memory_space<vmem>>, vector<1x2x8x64xbf16>
    %8 = vector.shape_cast %7 : vector<1x2x8x64xbf16> to vector<2x8x64xbf16>
    "tpu.trace_start"() <{level = 10 : i32, message = "hqd,hkd->hqk"}> : () -> ()
    %cst = arith.constant dense<0.000000e+00> : vector<2x8x8xf32>
    %9 = tpu.matmul %4, %6, %cst {dimension_numbers = #tpu.dot_dimension_numbers<[2], [2], [1], [1], [0, 0, 0, 1, 1, 1], [0], [0]>} : vector<2x8x64xbf16>, vector<2x8x64xbf16>, vector<2x8x8xf32> -> vector<2x8x8xf32>
    "tpu.trace_stop"() : () -> ()
    %cst_12 = arith.constant 1.250000e-01 : f32
    %10 = vector.broadcast %cst_12 : f32 to vector<2x8x8xf32>
    %11 = arith.mulf %9, %10 : vector<2x8x8xf32>
    %c0_13 = arith.constant 0 : index
    %c0_14 = arith.constant 0 : index
    %c0_15 = arith.constant 0 : index
    %12 = vector.load %arg8[%c0_13, %c0_14, %c0_15] : memref<2x8x1xf32, #tpu.memory_space<vmem>>, vector<2x8x1xf32>
    %cst_16 = arith.constant dense<0xFF800000> : vector<2x8xf32>
    %13 = vector.multi_reduction <maximumf>, %11, %cst_16 [2] : vector<2x8x8xf32> to vector<2x8xf32>
    %14 = vector.shape_cast %13 : vector<2x8xf32> to vector<2x8x1xf32>
    %15 = arith.maximumf %12, %14 : vector<2x8x1xf32>
    %16 = arith.subf %12, %15 : vector<2x8x1xf32>
    %17 = math.exp %16 : vector<2x8x1xf32>
    %18 = vector.broadcast %15 : vector<2x8x1xf32> to vector<2x8x8xf32>
    %19 = arith.subf %11, %18 : vector<2x8x8xf32>
    %20 = math.exp %19 : vector<2x8x8xf32>
    %c0_17 = arith.constant 0 : index
    %c0_18 = arith.constant 0 : index
    %c0_19 = arith.constant 0 : index
    %21 = vector.load %arg9[%c0_17, %c0_18, %c0_19] : memref<2x8x1xf32, #tpu.memory_space<vmem>>, vector<2x8x1xf32>
    %22 = arith.mulf %17, %21 : vector<2x8x1xf32>
    %cst_20 = arith.constant dense<0.000000e+00> : vector<2x8xf32>
    %23 = vector.multi_reduction <add>, %20, %cst_20 [2] : vector<2x8x8xf32> to vector<2x8xf32>
    %24 = vector.shape_cast %23 : vector<2x8xf32> to vector<2x8x1xf32>
    %25 = arith.addf %22, %24 : vector<2x8x1xf32>
    %c0_21 = arith.constant 0 : index
    %c0_22 = arith.constant 0 : index
    %c0_23 = arith.constant 0 : index
    %26 = vector.load %arg9[%c0_21, %c0_22, %c0_23] : memref<2x8x1xf32, #tpu.memory_space<vmem>>, vector<2x8x1xf32>
    tpu.vector_store %arg9[%c0_21, %c0_22, %c0_23], %25 {strides = array<i32>} : memref<2x8x1xf32, #tpu.memory_space<vmem>>, vector<2x8x1xf32>,
    %27 = arith.truncf %20 : vector<2x8x8xf32> to vector<2x8x8xbf16>
    "tpu.trace_start"() <{level = 10 : i32, message = "hqk,hkd->hqd"}> : () -> ()
    %cst_24 = arith.constant dense<0.000000e+00> : vector<2x8x64xf32>
    %28 = tpu.matmul %27, %8, %cst_24 {dimension_numbers = #tpu.dot_dimension_numbers<[2], [1], [1], [2], [0, 0, 0, 1, 1, 2], [0], [0]>} : vector<2x8x8xbf16>, vector<2x8x64xbf16>, vector<2x8x64xf32> -> vector<2x8x64xf32>
    "tpu.trace_stop"() : () -> ()
    %c0_25 = arith.constant 0 : index
    %c0_26 = arith.constant 0 : index
    %c0_27 = arith.constant 0 : index
    %29 = vector.load %arg10[%c0_25, %c0_26, %c0_27] : memref<2x8x64xf32, #tpu.memory_space<vmem>>, vector<2x8x64xf32>
    %30 = vector.broadcast %17 : vector<2x8x1xf32> to vector<2x8x64xf32>
    %31 = arith.mulf %30, %29 : vector<2x8x64xf32>
    %32 = arith.addf %31, %28 : vector<2x8x64xf32>
    %c0_28 = arith.constant 0 : index
    %c0_29 = arith.constant 0 : index
    %c0_30 = arith.constant 0 : index
    %33 = vector.load %arg10[%c0_28, %c0_29, %c0_30] : memref<2x8x64xf32, #tpu.memory_space<vmem>>, vector<2x8x64xf32>
    tpu.vector_store %arg10[%c0_28, %c0_29, %c0_30], %32 {strides = array<i32>} : memref<2x8x64xf32, #tpu.memory_space<vmem>>, vector<2x8x64xf32>,
    %c0_31 = arith.constant 0 : index
    %c0_32 = arith.constant 0 : index
    %c0_33 = arith.constant 0 : index
    %34 = vector.load %arg8[%c0_31, %c0_32, %c0_33] : memref<2x8x1xf32, #tpu.memory_space<vmem>>, vector<2x8x1xf32>
    tpu.vector_store %arg8[%c0_31, %c0_32, %c0_33], %15 {strides = array<i32>} : memref<2x8x1xf32, #tpu.memory_space<vmem>>, vector<2x8x1xf32>,
    %c0_i32_34 = arith.constant 0 : i32
    %35 = arith.cmpi eq, %arg2, %c0_i32_34 : i32
    %36 = arith.extui %35 : i1 to i32
    %c0_i32_35 = arith.constant 0 : i32
    %37 = arith.cmpi ne, %36, %c0_i32_35 : i32
    scf.if %37 {
      %c0_36 = arith.constant 0 : index
      %c0_37 = arith.constant 0 : index
      %c0_38 = arith.constant 0 : index
      %38 = vector.load %arg10[%c0_36, %c0_37, %c0_38] : memref<2x8x64xf32, #tpu.memory_space<vmem>>, vector<2x8x64xf32>
      %c0_39 = arith.constant 0 : index
      %c0_40 = arith.constant 0 : index
      %c0_41 = arith.constant 0 : index
      %39 = vector.load %arg9[%c0_39, %c0_40, %c0_41] : memref<2x8x1xf32, #tpu.memory_space<vmem>>, vector<2x8x1xf32>
      %40 = tpu.reciprocal %39 {approx = true} : vector<2x8x1xf32> -> vector<2x8x1xf32>
      %41 = vector.broadcast %40 : vector<2x8x1xf32> to vector<2x8x64xf32>
      %42 = arith.mulf %38, %41 : vector<2x8x64xf32>
      %43 = arith.truncf %42 : vector<2x8x64xf32> to vector<2x8x64xbf16>
      %c0_42 = arith.constant 0 : index
      %c0_43 = arith.constant 0 : index
      %c0_44 = arith.constant 0 : index
      %44 = vector.load %arg6[%c0_42, %c0_43, %c0_44] : memref<2x64x32xbf16, #tpu.memory_space<vmem>>, vector<2x64x32xbf16>
      "tpu.trace_start"() <{level = 10 : i32, message = "hqd,hdo->hqo"}> : () -> ()
      %cst_45 = arith.constant dense<0.000000e+00> : vector<2x8x32xf32>
      %45 = tpu.matmul %43, %44, %cst_45 {dimension_numbers = #tpu.dot_dimension_numbers<[2], [1], [1], [2], [0, 0, 0, 1, 1, 2], [0], [0]>} : vector<2x8x64xbf16>, vector<2x64x32xbf16>, vector<2x8x32xf32> -> vector<2x8x32xf32>
      "tpu.trace_stop"() : () -> ()
      %cst_46 = arith.constant dense<0.000000e+00> : vector<8x32xf32>
      %46 = vector.multi_reduction <add>, %45, %cst_46 [0] : vector<2x8x32xf32> to vector<8x32xf32>
      %c0_47 = arith.constant 0 : index
      %c0_48 = arith.constant 0 : index
      %c0_49 = arith.constant 0 : index
      %47 = vector.load %arg7[%c0_47, %c0_48, %c0_49] : memref<1x8x32xf32, #tpu.memory_space<vmem>>, vector<1x8x32xf32>
      %48 = vector.shape_cast %47 : vector<1x8x32xf32> to vector<8x32xf32>
      %49 = vector.shape_cast %46 : vector<8x32xf32> to vector<1x8x32xf32>
      tpu.vector_store %arg7[%c0_47, %c0_48, %c0_49], %49 {strides = array<i32>} : memref<1x8x32xf32, #tpu.memory_space<vmem>>, vector<1x8x32xf32>,
    } else {
    }
    return
  }
  func.func @transform_0(%arg0: i32, %arg1: i32, %arg2: i32) -> (i32, i32, i32, i32) {
    %c0_i32 = arith.constant 0 : i32
    %c0_i32_0 = arith.constant 0 : i32
    %c0_i32_1 = arith.constant 0 : i32
    return %arg0, %c0_i32, %arg1, %c0_i32_0 : i32, i32, i32, i32
  }
  func.func @transform_1(%arg0: i32, %arg1: i32, %arg2: i32) -> (i32, i32, i32, i32) {
    %c0_i32 = arith.constant 0 : i32
    %c0_i32_0 = arith.constant 0 : i32
    %c0_i32_1 = arith.constant 0 : i32
    return %arg0, %c0_i32, %arg2, %c0_i32_0 : i32, i32, i32, i32
  }
  func.func @transform_2(%arg0: i32, %arg1: i32, %arg2: i32) -> (i32, i32, i32, i32) {
    %c0_i32 = arith.constant 0 : i32
    %c0_i32_0 = arith.constant 0 : i32
    %c0_i32_1 = arith.constant 0 : i32
    return %arg0, %c0_i32, %arg2, %c0_i32_0 : i32, i32, i32, i32
  }
  func.func @transform_3(%arg0: i32, %arg1: i32, %arg2: i32) -> (i32, i32, i32) {
    %c0_i32 = arith.constant 0 : i32
    %c0_i32_0 = arith.constant 0 : i32
    %c0_i32_1 = arith.constant 0 : i32
    %c0_i32_2 = arith.constant 0 : i32
    return %c0_i32, %c0_i32_0, %c0_i32_1 : i32, i32, i32
  }
  func.func @transform_4(%arg0: i32, %arg1: i32, %arg2: i32) -> (i32, i32, i32) {
    %c0_i32 = arith.constant 0 : i32
    %c0_i32_0 = arith.constant 0 : i32
    return %arg0, %arg1, %c0_i32 : i32, i32, i32
  }
}

</mosaic_0001>

<bundles_post_ra>
// kernel: attention_forward.2
= control target key start
LH: loop header
LB: loop body
LE: loop exit
PB: predicated region body
PF: predicated region fallthrough
CT: control target
= control target key end

     0   :  { %s455_s9 = smov 0   ;;  %s457_s10 = smov 0   ;;  %s528_s0 = inlined_call_operand.vmem [shape: bf16[2,8,32], index: 0, kind: input, shape index: {}]   ;;  %s529_s1 = inlined_call_operand.vmem [shape: bf16[32,384], index: 1, kind: input, shape index: {}]   ;;  %s530_s2 = inlined_call_operand.vmem [shape: bf16[2,8,384], index: 2, kind: output, shape index: {}]  }
   0x1   :  { %s459_s11 = smov 0  }
   0x2 LB: > { %s24_s12 = sadd.s32 1, %s434_s10  ;;  %p353_p0 = scmp.ge.s32.totalorder %s438_s11, 1  ;;  %s438_s11 = sphi %s459_s11, %s12_s11   ;;  %s434_s10 = sphi %s457_s10, %s532_s10   ;;  %s430_s9 = sphi %s455_s9, %s531_s9  }
   0x3   : > { %p26_p1 = scmp.ge.s32.totalorder %s24_s12, 2  ;;  %p130_p2 = scmp.lt.s32.totalorder %s438_s11, 3 }
   0x5   : > { %s534_s12 = smov (%p26_p1, %s24_s12), 0  ;;  %p131_p3 = pnand %p353_p0, %p130_p2 }
   0x6   : > { %p158_p4 = scmp.lt.s32.totalorder (!%p131_p3), %s430_s9, 1 }
   0x7   : > { %134 = sbr.rel (%p131_p3) target bundleno = 163 (0xa3), region = 28 }
   0xc   : > { %v370_v0 = vld [vmem:[%s529_s1 + $0x18] sm:$0xf]  ;;  %v389_v1 = vld [vmem:[%s529_s1 + $0x20] sm:$0xf0]  ;;  %v388_v2 = vld [vmem:[%s529_s1 + $0x1c] sm:$0xf] }
   0xd   : > { %v371_v3 = vor.u32 %v389_v1, %v370_v0  ;;  %v372_v4 = vld [vmem:[%s529_s1 + $0x24] sm:$0xf0]  ;;  %v378_v5 = vld [vmem:[%s529_s1 + $0x20] sm:$0xf]  ;;  %v390_v6 = vld [vmem:[%s529_s1 + $0x28] sm:$0xf0] }
   0xe   : > { %v375_v7 = vor.u32 %v388_v2, %v372_v4  ;;  %v379_v8 = vor.u32 %v390_v6, %v378_v5  ;;  %v358_v9 = vld [vmem:[%s529_s1] sm:$0xf]  ;;  %v386_v10 = vld [vmem:[%s529_s1 + $0x8] sm:$0xf0]  ;;  %v385_v11 = vld [vmem:[%s529_s1 + $0x4] sm:$0xf] }
   0xf   : > { %226 = vmatpush.bf16.msra.mxu0 %v371_v3  ;;  %v359_v12 = vor.u32 %v386_v10, %v358_v9  ;;  %v360_v13 = vld [vmem:[%s529_s1 + $0xc] sm:$0xf0]  ;;  %v366_v14 = vld [vmem:[%s529_s1 + $0x8] sm:$0xf]  ;;  %v387_v15 = vld [vmem:[%s529_s1 + $0x10] sm:$0xf0] }
  0x10   : > { %239 = vmatpush.bf16.msra.mxu1 %v375_v7  ;;  %252 = vmatpush.bf16.msra.mxu2 %v379_v8  ;;  %v363_v16 = vor.u32 %v385_v11, %v360_v13  ;;  %v367_v17 = vor.u32 %v387_v15, %v366_v14  ;;  %s536_s9 = smov (!%p158_p4, %s430_s9), 1  ;;  %vm216_vm0 = vcmask 261120  }
  0x11   : > { %s354_s13 = sshll.u32 %s536_s9, 2  ;;  %s391_s17 = smul.u32 12, %s536_s9 }
  0x12   : > { %s164_s16 = scalar_lea.vmem %s528_s0, %s354_s13 }
  0x13   : > { %227 = vmatpush.bf16.msra.mxu0 %v359_v12  ;;  %v175_v18 = vld [vmem:[%s164_s16] sm:$0xf]  ;;  %s173_s20 = scalar_lea.vmem %s530_s2, %s391_s17 }
  0x14   : > { %240 = vmatpush.bf16.msra.mxu1 %v363_v16  ;;  %253 = vmatpush.bf16.msra.mxu2 %v367_v17 }
  0x16   : > { %380 = vmatmul.msk.bf16.vlgmr.msra.gmra.mxu0 %vm216_vm0, %v175_v18 }
  0x17   : > { %381 = vmatmul.msk.bf16.vlgmr.msra.gmra.mxu1 %vm216_vm0, %v175_v18  ;;  %382 = vmatmul.msk.bf16.vlgmr.msra.gmra.mxu2 %vm216_vm0, %v175_v18 }
  0x93   : > { %v229_v19 = vpop.f32.mrf.mxu0 }
  0x94   : > { %v242_v20 = vpop.f32.mrf.mxu1 }
  0x95   : > { %v259_v21 = vpack.c.bf16 %v242_v20, %v229_v19 }
  0x97   : > { %261 = vst [vmem:[%s173_s20] sm:$0xff] %v259_v21 }
  0x9a   : > { %v255_v22 = vpop.f32.mrf.mxu2 }
  0x9b   : > { %v260_v23 = vpack.c.bf16 %v255_v22, %v255_v22  ;;  %v231_v24 = vpop.f32.mrf.mxu0 }
  0x9c   : > { %v244_v25 = vpop.f32.mrf.mxu1 }
  0x9d   : > { %262 = vst [vmem:[%s173_s20 + $0x8] sm:$0xf] %v260_v23 }
  0xa2   : > { %v257_v26 = vpop.f32.mrf.mxu2 }
  0xa3 PF: > { %s12_s11 = sadd.s32 1, %s438_s11   ;;  %s531_s9 = smov %s434_s10 }
  0xa4   : > { %p9_p5 = scmp.ge.s32.totalorder %s12_s11, 4   ;;  %s532_s10 = smov %s534_s12 }
  0xa6   :  { %11 = sbr.rel (!%p9_p5) target bundleno = 2 (0x2), region = 58 }

// kernel: attention_forward.3
= control target key start
LH: loop header
LB: loop body
LE: loop exit
PB: predicated region body
PF: predicated region fallthrough
CT: control target
= control target key end

     0   :  { %9 = vsyncpa [#allocation6], 0  ;;  %s1115_s0 = inlined_call_operand.vmem [shape: bf16[2,2,8,64], index: 0, kind: input, shape index: {}]   ;;  %s1116_s1 = inlined_call_operand.vmem [shape: bf16[2,2,8,64], index: 1, kind: input, shape index: {}]   ;;  %s1117_s2 = inlined_call_operand.vmem [shape: bf16[2,2,8,64], index: 2, kind: input, shape index: {}]   ;;  %s1118_s3 = inlined_call_operand.vmem [shape: bf16[2,64,32], index: 3, kind: input, shape index: {}]   ;;  %s1119_s4 = inlined_call_operand.hbm [shape: f32[2,8,32], index: 4, kind: output, shape index: {}]  }
   0x1   :  { %11 = vsyncpa [#allocation6 + $0x1], 0  ;;  %s959_s15 = smov 0   ;;  %s961_s16 = smov 0  }
   0x2   :  { %s963_s17 = smov 0   ;;  %s965_s18 = smov 0  }
   0x3   :  { %s967_s19 = smov 0   ;;  %s969_s20 = smov 0  }
   0x4 LB: > { %s713_s21 = sadd.s32 4294967295, %s929_s20   ;;  %s714_s22 = sadd.s32 4294967294, %s929_s20   ;;  %s929_s20 = sphi %s969_s20, %s17_s20   ;;  %s925_s19 = sphi %s967_s19, %s1126_s19   ;;  %s921_s18 = sphi %s965_s18, %s1125_s18   ;;  %s917_s17 = sphi %s963_s17, %s1124_s17   ;;  %s913_s16 = sphi %s961_s16, %s1123_s16   ;;  %s909_s15 = sphi %s959_s15, %s1122_s15  }
   0x5   : > { %s36_s23 = sadd.s32 1, %s925_s19  ;;  %s150_s24 = sadd.s32 1, %s917_s17 }
   0x6   : > { %p38_p0 = scmp.ge.s32.totalorder %s36_s23, 2  ;;  %p160_p1 = scmp.ne.s32.totalorder %s917_s17, %s913_s16 }
   0x7   : > { %p161_p2 = scmp.eq.s32.totalorder %s713_s21, 1  ;;  %p166_p3 = scmp.ne.s32.totalorder %s913_s16, %s909_s15 }
   0x8   : > { %s1128_s23 = smov (%p38_p0, %s36_s23), 0  ;;  %p167_p5 = scmp.eq.s32.totalorder %s714_s22, 1 }
   0x9   : > { %p999_p4 = por %p161_p2, %p160_p1  ;;  %s145_s26 = ssub.s32 %s925_s19, %s1128_s23 }
   0xa   : > { %p717_p6 = scmp.ge.s32.totalorder %s929_s20, 1  ;;  %p148_p7 = scmp.eq.s32.totalorder %s145_s26, 0 }
   0xb   : > { %p1006_p8 = por %p167_p5, %p166_p3  ;;  %p221_p9 = scmp.lt.s32.totalorder %s929_s20, 3 }
   0xc   : > { %s1012_s28 = scalar_select %p148_p7, %s917_s17, %s150_s24  }
   0xd   : > { %p222_p10 = pnand %p717_p6, %p221_p9 }
   0xe   : > { %p266_p11 = scmp.lt.s32.totalorder (!%p222_p10), %s921_s18, 1  ;;  %s263_s14 = sand.u32 (!%p222_p10), 1, %s913_s16  }
   0xf   : > { %225 = sbr.rel (%p222_p10) target bundleno = 807 (0x327), region = 36  ;;  %s764_s21 = sshll.u32 (!%p222_p10), %s921_s18, 3 }
  0x10   : > { %s718_s22 = sshll.u32 (!%p222_p10), %s263_s14, 3  ;;  %s871_s11 = scalar_lea.hbm (!%p222_p10), %s1119_s4, 16 }
  0x14   : > { %s267_s29 = scalar_select %p266_p11, %s921_s18, 1  ;;  %vm300_vm0 = vcmask 523264   ;;  %vm295_vm1 = vcmask 7168   ;;  %v931_v6 = vmov -inf   ;;  %vm352_vm2 = vcmask 64512   ;;  %v773_v49 = vld [vmem:[%s1118_s3 + $0x18] sm:$0xff] }
  0x15   : > { %296 = vst.msk [vmem:[#allocation2] sm:$0xff] %vm295_vm1, %v931_v6  ;;  %v932_v15 = vmov 0   ;;  %v933_v16 = vmov 0.0   ;;  %vm403_vm3 = vcmask 1043456   ;;  %v772_v50 = vld [vmem:[%s1118_s3 + $0x10] sm:$0xff]  ;;  %v771_v53 = vld [vmem:[%s1118_s3 + $0x8] sm:$0xff] }
  0x16   : > { %s1016_s30 = sshll.u32 %s267_s29, 3  ;;  %297 = vst.msk [vmem:[#allocation2 + $0x8] sm:$0xff] %vm295_vm1, %v931_v6  ;;  %836 = vset.pattern.permute.xlu1 %v932_v15  ;;  %837 = vset.pattern.permute.xlu0 %v932_v15  ;;  %s595_s29 = scalar_lea.hbm %s1119_s4, %s764_s21  ;;  %vm578_vm4 = vcmask 261120  }
  0x17   : > { %s281_s7 = scalar_lea.vmem %s1116_s1, %s1016_s30  ;;  %s273_s10 = scalar_lea.vmem %s1115_s0, %s1016_s30  ;;  %838 = vset.pattern.permute.xlu2 %v932_v15  ;;  %301 = vst.msk [vmem:[#allocation4] sm:$0xff] %vm300_vm0, %v933_v16 }
  0x18   : > { %v305_v0 = vld [vmem:[%s281_s7] sm:$0xf]  ;;  %v306_v1 = vld [vmem:[%s281_s7 + $0x4] sm:$0xf]  ;;  %298 = vst.msk [vmem:[#allocation3] sm:$0xff] %vm295_vm1, %v933_v16  ;;  %s289_s13 = scalar_lea.vmem %s1117_s2, %s1016_s30  ;;  %s265_s30 = scalar_lea.vmem [#allocation5], %s718_s22 }
  0x19   : > { %v314_v2 = vsel %vm300_vm0, %v305_v0, 0  ;;  %v333_v3 = vsel %vm300_vm0, %v306_v1, 0  ;;  %v303_v4 = vld [vmem:[%s273_s10] sm:$0xf]  ;;  %v304_v5 = vld [vmem:[%s273_s10 + $0x4] sm:$0xf] }
  0x1a   : > { %323 = vmatpush.bf16.xpose.msra.mxu0 %v314_v2  ;;  %342 = vmatpush.bf16.xpose.msra.mxu1 %v333_v3  ;;  %299 = vst.msk [vmem:[#allocation3 + $0x8] sm:$0xff] %vm295_vm1, %v933_v16  ;;  %v307_v29 = vld [vmem:[%s289_s13] sm:$0xf]  ;;  %v308_v31 = vld [vmem:[%s289_s13 + $0x4] sm:$0xf]  ;;  %s597_s5 = sshll.u32 %s265_s30, 4  ;;  %s598_s5 = int_to_ptr.vmem [resolvable:$true] %s597_s5 }
  0x1b   : > { %302 = vst.msk [vmem:[#allocation4 + $0x8] sm:$0xff] %vm300_vm0, %v933_v16  ;;  %v405_v30 = vsel %vm403_vm3, %v307_v29, 0  ;;  %v424_v32 = vsel %vm403_vm3, %v308_v31, 0  ;;  %s599_s6 = sshll.u32 %s595_s29, 4  ;;  %s584_s7 = scalar_lea.sflag [#allocation6], %s263_s14  ;;  %s600_s6 = int_to_ptr.hbm [resolvable:$true] %s599_s6 }
  0x1c   : > { %v350_v17 = vld [vmem:[#allocation2] sm:$0xff]  ;;  %414 = vmatpush.bf16.msra.mxu2 %v405_v30  ;;  %433 = vmatpush.bf16.msra.mxu3 %v424_v32  ;;  %s865_s8 = sshra.s32 %s600_s6, 4  ;;  %s866_s8 = int_to_ptr.hbm [resolvable:$true] %s865_s8 }
  0x1d   : > { %v351_v22 = vld [vmem:[#allocation2 + $0x8] sm:$0xff]  ;;  %s867_s18 = scalar_lea.hbm %s866_s8, 8  ;;  %p872_p1 = scmp.lt.s32.totalorder %s866_s8, %s1119_s4 }
  0x1e   : > { %v439_v57 = vld [vmem:[#allocation4] sm:$0xff]  ;;  %p868_p12 = scmp.ne.s32.totalorder %s866_s8, %s867_s18  ;;  %p873_p2 = scmp.lt.s32.totalorder %s871_s11, %s867_s18 }
  0x1f   : > { %v383_v45 = vld [vmem:[#allocation3] sm:$0xff] }
  0x20   : > { %529 = vmatpush.bf16.msrb.mxu2 %v773_v49  ;;  %p869_p13 = pnand %p868_p12, %p999_p4  ;;  %p874_p3 = por %p873_p2, %p872_p1 }
  0x21   : > { %725 = vmatmul.msk.bf16.vlgmr.msra.gmra.mxu0 %vm300_vm0, %v303_v4  ;;  %726 = vmatmul.msk.bf16.vlgmr.msra.gmra.mxu1 %vm300_vm0, %v304_v5  ;;  %v384_v51 = vld [vmem:[#allocation3 + $0x8] sm:$0xff] }
  0x22   : > { %v440_v0 = vld [vmem:[#allocation4 + $0x8] sm:$0xff]  ;;  %p870_p0 = pneg %p869_p13 }
  0x24   : > { %530 = vmatpush.bf16.msrb.mxu2 %v772_v50  ;;  %p875_p5 = pnand %p874_p3, %p870_p0 }
  0x28   : > { %531 = vmatpush.bf16.msrb.mxu2 %v771_v53 }
  0x9e   : > { %v325_v7 = vpop.f32.mrf.mxu0  ;;  %v344_v8 = vpop.f32.mrf.mxu1 }
  0x9f   : > { %v348_v9 = vmul.f32 0.125, %v325_v7  ;;  %v349_v11 = vmul.f32 0.125, %v344_v8  ;;  %v770_v8 = vld [vmem:[%s1118_s3] sm:$0xff] }
  0xa0   : > { %532 = vmatpush.bf16.msrb.mxu2 %v770_v8 }
  0xa1   : > { %v353_v10 = vsel %vm352_vm2, %v348_v9, -inf  ;;  %v356_v14 = vsel %vm352_vm2, %v349_v11, -inf }
  0xa2   : > { %354 = vmax.xlane.f32.xlu0 %v353_v10  ;;  %v776_v10 = vld [vmem:[%s1118_s3 + $0x30] sm:$0xff] }
  0xa6   : > { %v327_v12 = vpop.f32.mrf.mxu0  ;;  %v346_v13 = vpop.f32.mrf.mxu1 }
  0xaa   : > { %357 = vmax.xlane.f32.xlu0 %v356_v14  ;;  %v774_v14 = vld [vmem:[%s1118_s3 + $0x20] sm:$0xff] }
 0x115   : > { %v355_v18 = vpop.xlane.xlu0 %354 }
 0x116   : > { %v359_v19 = vmax.f32 %v350_v17, %v355_v18 }
 0x118   : > { %v361_v20 = vsub.f32 %v350_v17, %v359_v19  ;;  %457 = vst.msk [vmem:[#allocation2] sm:$0xff] %vm295_vm1, %v359_v19  ;;  %369 = vperm.xlu1 %836, %v359_v19  }
 0x11a   : > { %v363_v21 = vmul.f32 1.442695, %v361_v20 }
 0x11c   : > { %839 = vpow2.f32 %v363_v21 }
 0x11d   : > { %v358_v23 = vpop.xlane.xlu0 %357 }
 0x11e   : > { %v360_v24 = vmax.f32 %v351_v22, %v358_v23 }
 0x120   : > { %v362_v25 = vsub.f32 %v351_v22, %v360_v24  ;;  %458 = vst.msk [vmem:[#allocation2 + $0x8] sm:$0xff] %vm295_vm1, %v360_v24  ;;  %374 = vperm.xlu1 %836, %v360_v24  }
 0x122   : > { %v840_v26 = vpop.eup %839  ;;  %v365_v27 = vmul.f32 1.442695, %v362_v25 }
 0x123   : > { %443 = vperm.xlu0 %837, %v840_v26   ;;  %v385_v46 = vmul.f32 %v840_v26, %v383_v45 }
 0x124   : > { %841 = vpow2.f32 %v365_v27 }
 0x12a   : > { %v842_v28 = vpop.eup %841 }
 0x12b   : > { %448 = vperm.xlu1 %836, %v842_v28   ;;  %v386_v52 = vmul.f32 %v842_v28, %v384_v51 }
 0x18a   : > { %v370_v33 = vpop.permute.xlu1 %369 }
 0x18b   : > { %v377_v34 = vsub.f32 %v348_v9, %v370_v33  ;;  %v777_v9 = vld [vmem:[%s1118_s3 + $0x38] sm:$0xff] }
 0x18c   : > { %569 = vmatpush.bf16.msrb.mxu3 %v777_v9 }
 0x18d   : > { %v379_v35 = vmul.f32 1.442695, %v377_v34 }
 0x18f   : > { %843 = vpow2.f32 %v379_v35 }
 0x190   : > { %570 = vmatpush.bf16.msrb.mxu3 %v776_v10 }
 0x192   : > { %v375_v36 = vpop.permute.xlu1 %374 }
 0x193   : > { %v378_v37 = vsub.f32 %v349_v11, %v375_v36  ;;  %v775_v11 = vld [vmem:[%s1118_s3 + $0x28] sm:$0xff] }
 0x194   : > { %571 = vmatpush.bf16.msrb.mxu3 %v775_v11 }
 0x195   : > { %v844_v38 = vpop.eup %843  ;;  %v381_v39 = vmul.f32 1.442695, %v378_v37  ;;  %v444_v58 = vpop.permute.xlu0 %443 }
 0x196   : > { %v387_v40 = vsel %vm352_vm2, %v844_v38, 0.0  ;;  %v398_v41 = vpack.c.bf16 %v844_v38, %v844_v38  ;;  %v451_v59 = vmul.f32 %v444_v58, %v439_v57 }
 0x197   : > { %845 = vpow2.f32 %v381_v39  ;;  %388 = vadd.xlane.f32.xlu2 %v387_v40 }
 0x198   : > { %727 = vmatmul.msk.bf16.vlgmr.msra.gmra.mxu2 %vm352_vm2, %v398_v41  ;;  %572 = vmatpush.bf16.msrb.mxu3 %v774_v14 }
 0x19d   : > { %v846_v42 = vpop.eup %845  ;;  %v449_v1 = vpop.permute.xlu1 %448 }
 0x19e   : > { %v390_v43 = vsel %vm352_vm2, %v846_v42, 0.0  ;;  %v399_v44 = vpack.c.bf16 %v846_v42, %v846_v42  ;;  %v452_v2 = vmul.f32 %v449_v1, %v440_v0 }
 0x19f   : > { %391 = vadd.xlane.f32.xlu2 %v390_v43 }
 0x1a0   : > { %728 = vmatmul.msk.bf16.vlgmr.msra.gmra.mxu3 %vm352_vm2, %v399_v44 }
 0x20a   : > { %v389_v47 = vpop.xlane.xlu2 %388 }
 0x20b   : > { %v393_v48 = vadd.f32 %v389_v47, %v385_v46 }
 0x20d   : > { %396 = vst.msk [vmem:[#allocation3] sm:$0xff] %vm295_vm1, %v393_v48 }
 0x212   : > { %v392_v54 = vpop.xlane.xlu2 %391 }
 0x213   : > { %v394_v55 = vadd.f32 %v392_v54, %v386_v52 }
 0x214   : > { %v464_v56 = vld [vmem:[#allocation3] sm:$0xff] }
 0x215   : > { %397 = vst.msk [vmem:[#allocation3 + $0x8] sm:$0xff] %vm295_vm1, %v394_v55  ;;  %847 = vrcp.f32 %v464_v56 }
 0x21b   : > { %v848_v60 = vpop.eup %847  ;;  %v416_v61 = vpop.f32.mrf.mxu2 }
 0x21c   : > { %v453_v62 = vadd.f32 %v451_v59, %v416_v61  ;;  %470 = vperm.xlu2 %838, %v848_v60   ;;  %v465_v63 = vld [vmem:[#allocation3 + $0x8] sm:$0xff] }
 0x21d   : > { %849 = vrcp.f32 %v465_v63 }
 0x21e   : > { %455 = vst.msk [vmem:[#allocation4] sm:$0xff] %vm300_vm0, %v453_v62 }
 0x223   : > { %v850_v3 = vpop.eup %849  ;;  %v418_v4 = vpop.f32.mrf.mxu2 }
 0x224   : > { %v435_v5 = vpop.f32.mrf.mxu3  ;;  %475 = vperm.xlu1 %836, %v850_v3  }
 0x225   : > { %v454_v6 = vadd.f32 %v452_v2, %v435_v5  ;;  %v462_v13 = vld [vmem:[#allocation4] sm:$0xff] }
 0x227   : > { %456 = vst.msk [vmem:[#allocation4 + $0x8] sm:$0xff] %vm300_vm0, %v454_v6 }
 0x22c   : > { %v437_v7 = vpop.f32.mrf.mxu3 }
 0x22e   : > { %v463_v17 = vld [vmem:[#allocation4 + $0x8] sm:$0xff] }
 0x276   : > { %v471_v12 = vpop.permute.xlu2 %470 }
 0x277   : > { %v478_v15 = vmul.f32 %v471_v12, %v462_v13 }
 0x279   : > { %v480_v16 = vpack.c.bf16 %v478_v15, %v478_v15 }
 0x27b   : > { %745 = vmatmul.msk.bf16.vlgmr.msrb.gmra.mxu2 %vm300_vm0, %v480_v16 }
 0x296   : > { %v476_v18 = vpop.permute.xlu1 %475 }
 0x297   : > { %v479_v19 = vmul.f32 %v476_v18, %v463_v17 }
 0x299   : > { %v481_v20 = vpack.c.bf16 %v479_v19, %v479_v19 }
 0x29b   : > { %762 = vmatmul.msk.bf16.vlgmr.msrb.gmra.mxu3 %vm300_vm0, %v481_v20 }
 0x2fe   : > { %v534_v21 = vpop.f32.mrf.mxu2 }
 0x2ff   : > { %v579_v24 = vsel %vm578_vm4, %v534_v21, 0.0 }
 0x306   : > { %v536_v22 = vpop.f32.mrf.mxu2 }
 0x31e   : > { %v574_v23 = vpop.f32.mrf.mxu3 }
 0x31f   : > { %v580_v25 = vsel %vm578_vm4, %v574_v23, 0.0 }
 0x320   : > { %v581_v26 = vadd.f32 %v580_v25, %v579_v24 }
 0x322   : > { %582 = vst.msk [vmem:[%s265_s30] sm:$0xff] %vm578_vm4, %v581_v26 }
 0x323   : > { %878 = shalt.err (!%p875_p5)
}
 0x324   : > { %778 = dma.vmem_to_hbm [thread:$0]  (%p999_p4), %s598_s5, 128, %s600_s6, %s584_s7  }
 0x326   : > { %v576_v27 = vpop.f32.mrf.mxu3 }
 0x327 PF: > { %p784_p6 = scmp.ge.s32.totalorder %s929_s20, 2  ;;  %s611_s14 = sand.u32 1, %s909_s15  }
 0x328   : > { %s612_s21 = scalar_lea.sflag [#allocation6], %s611_s14 }
 0x329   : > { %p781_p7 = pnand %p784_p6, %p1006_p8 }
 0x32b   : > { %p782_p9 = pneg %p781_p7 }
 0x32d   : > { %904 = dma.done.wait (%p782_p9), %s612_s21, 128  }
 0x32e   : > { %906 = vsyncadd (%p782_p9), %s612_s21, 4294967168  ;;  %s17_s20 = sadd.s32 1, %s929_s20   ;;  %s1122_s15 = smov %s913_s16 }
 0x32f   : > { %p14_p10 = scmp.ge.s32.totalorder %s17_s20, 4   ;;  %s1123_s16 = smov %s917_s17 }
 0x330   : > { %s1124_s17 = smov %s1012_s28  ;;  %s1125_s18 = smov %s925_s19 }
 0x331   : > { %s1126_s19 = smov %s1128_s23  ;;  %16 = sbr.rel (!%p14_p10) target bundleno = 4 (0x4), region = 85 }
 0x336   :  { %618 = vsyncpa [#allocation6], 1 }
 0x337   :  { %620 = vsyncpa [#allocation6 + $0x1], 1 }

</bundles_post_ra>
